<compile_context>
chip_gen: v7x
topology: tpu7x:2x2x1
jax: 0.10.0
libtpu: 0.0.40
codegen_flags: <defaults>
</compile_context>

<pallas_src>
import functools

import jax
import jax.numpy as jnp
from jax.experimental import pallas as pl
from jax.experimental.pallas import tpu as pltpu


def _inverted_residual_kernel(x_ref, w1t_ref, b1_ref, wdw_ref, b2_ref,
                              w3t_ref, b3_ref, o_ref,
                              *, H, W, hidden, stride, use_res):
    HW = H * W
    x = x_ref[0]                                      # (cin, H*W), lane-dense

    # ---- 1x1 expansion conv (+ folded BN) + ReLU6 ----
    h = jnp.dot(w1t_ref[...], x, preferred_element_type=jnp.float32)
    h = jnp.clip(h + b1_ref[...], 0.0, 6.0)           # (hidden, H*W)

    # ---- 3x3 depthwise conv, pad=1 (+ folded BN) + ReLU6, in registers ----
    wdw = wdw_ref[...]                                # (hidden, 9), loaded once
    pad = W + 1
    zpad = jnp.zeros((hidden, pad), jnp.float32)
    hp = jnp.concatenate([zpad, h, zpad], axis=1)     # zeros cover top/bottom OOB rows

    lane = jax.lax.broadcasted_iota(jnp.int32, (1, HW), 1)
    col = lane % W                                    # computed once, reused per tap
    left_ok = col >= 1                                # j-1 stays in-row
    right_ok = col <= W - 2                           # j+1 stays in-row

    acc = jnp.zeros((hidden, HW), jnp.float32)
    for dr in (-1, 0, 1):
        for dc in (-1, 0, 1):
            off = dr * W + dc
            # tap[p] == h[p + off]  (zero where the source row is out of bounds)
            tap = hp[:, pad + off: pad + off + HW]
            if dc == -1:
                tap = jnp.where(left_ok, tap, 0.0)
            elif dc == 1:
                tap = jnp.where(right_ok, tap, 0.0)
            k = (dr + 1) * 3 + (dc + 1)
            w_tap = wdw[:, k:k + 1]                   # (hidden, 1), bcast over lanes
            acc = acc + tap * w_tap

    if stride == 2:
        # TODO(synk): stride==2 path computes the full stride-1 map and then
        # downsamples; left unoptimized (not exercised by this module config).
        Ho = (H - 1) // 2 + 1
        Wo = (W - 1) // 2 + 1
        acc = acc.reshape(hidden, H, W)[:, ::2, ::2].reshape(hidden, Ho * Wo)

    acc = jnp.clip(acc + b2_ref[...], 0.0, 6.0)

    # ---- 1x1 projection conv (+ folded BN) ----
    y = jnp.dot(w3t_ref[...], acc, preferred_element_type=jnp.float32) + b3_ref[...]
    if use_res:
        y = y + x                                     # residual (stride==1, cin==oup)
    o_ref[0] = y                                      # (oup, Ho*Wo), lane-dense store


def inverted_residual(x_nchw, folded, *, stride, use_res):
    """folded: dict with w1t (hidden,cin), b1 (hidden,1), wdwt (hidden,9),
    b2 (hidden,1), w3t (oup,hidden), b3 (oup,1). Input/output are NCHW."""
    N, cin, H, W = x_nchw.shape
    hidden = folded["w1t"].shape[0]
    oup = folded["w3t"].shape[0]
    Ho = (H + 2 - 3) // stride + 1
    Wo = (W + 2 - 3) // stride + 1

    # Free reshape: NCHW -> (N, C, H*W); kernel works in this layout directly.
    x = x_nchw.reshape(N, cin, H * W).astype(jnp.float32)

    kernel = functools.partial(
        _inverted_residual_kernel,
        H=H, W=W, hidden=hidden, stride=stride, use_res=use_res)

    out = pl.pallas_call(
        kernel,
        out_shape=jax.ShapeDtypeStruct((N, oup, Ho * Wo), jnp.float32),
        grid_spec=pltpu.PrefetchScalarGridSpec(
            num_scalar_prefetch=0,
            grid=(N,),
            in_specs=[
                pl.BlockSpec((1, cin, H * W), lambda n: (n, 0, 0)),
                pl.BlockSpec((hidden, cin), lambda n: (0, 0)),
                pl.BlockSpec((hidden, 1), lambda n: (0, 0)),
                pl.BlockSpec((hidden, 9), lambda n: (0, 0)),
                pl.BlockSpec((hidden, 1), lambda n: (0, 0)),
                pl.BlockSpec((oup, hidden), lambda n: (0, 0)),
                pl.BlockSpec((oup, 1), lambda n: (0, 0)),
            ],
            out_specs=pl.BlockSpec((1, oup, Ho * Wo), lambda n: (n, 0, 0)),
        ),
        # Batch axis is independent -> megacore sharding on v7x; harmless on v5e/v6e.
        compiler_params=pltpu.CompilerParams(dimension_semantics=("parallel",)),
    )(x, folded["w1t"], folded["b1"], folded["wdwt"], folded["b2"],
      folded["w3t"], folded["b3"])

    return out.reshape(N, oup, Ho, Wo)                # free reshape back to NCHW


def make_params(key, inp, oup, expand_ratio):
    hidden = round(inp * expand_ratio)
    ks = jax.random.split(key, 16)
    p = {
        "w1":  jax.random.normal(ks[0], (inp, hidden), jnp.float32) * 0.1,
        "wdw": jax.random.normal(ks[1], (3, 3, hidden), jnp.float32) * 0.1,
        "w3":  jax.random.normal(ks[2], (hidden, oup), jnp.float32) * 0.1,
        "g1":  jax.random.uniform(ks[3], (hidden,), jnp.float32, 0.5, 1.5),
        "be1": jax.random.normal(ks[4], (hidden,), jnp.float32) * 0.1,
        "m1":  jax.random.normal(ks[5], (hidden,), jnp.float32) * 0.1,
        "v1":  jax.random.uniform(ks[6], (hidden,), jnp.float32, 0.5, 1.5),
        "g2":  jax.random.uniform(ks[7], (hidden,), jnp.float32, 0.5, 1.5),
        "be2": jax.random.normal(ks[8], (hidden,), jnp.float32) * 0.1,
        "m2":  jax.random.normal(ks[9], (hidden,), jnp.float32) * 0.1,
        "v2":  jax.random.uniform(ks[10], (hidden,), jnp.float32, 0.5, 1.5),
        "g3":  jax.random.uniform(ks[11], (oup,), jnp.float32, 0.5, 1.5),
        "be3": jax.random.normal(ks[12], (oup,), jnp.float32) * 0.1,
        "m3":  jax.random.normal(ks[13], (oup,), jnp.float32) * 0.1,
        "v3":  jax.random.uniform(ks[14], (oup,), jnp.float32, 0.5, 1.5),
    }
    return p, hidden


def fold_bn(p, hidden, oup, eps=1e-5):
    s1 = p["g1"] / jnp.sqrt(p["v1"] + eps)
    s2 = p["g2"] / jnp.sqrt(p["v2"] + eps)
    s3 = p["g3"] / jnp.sqrt(p["v3"] + eps)
    return {
        "w1t":  jnp.transpose(p["w1"] * s1[None, :]),            # (hidden, cin)
        "b1":   (p["be1"] - p["m1"] * s1).reshape(hidden, 1),
        "wdwt": jnp.transpose((p["wdw"] * s2).reshape(9, hidden)),  # (hidden, 9)
        "b2":   (p["be2"] - p["m2"] * s2).reshape(hidden, 1),
        "w3t":  jnp.transpose(p["w3"] * s3[None, :]),            # (oup, hidden)
        "b3":   (p["be3"] - p["m3"] * s3).reshape(oup, 1),
    }


def ref_forward(x_nchw, p, *, stride, use_res, eps=1e-5):
    """Pure-JAX reference mirroring the PyTorch module (eval-mode BN)."""
    x = jnp.transpose(x_nchw, (0, 2, 3, 1)).astype(jnp.float32)
    N, H, W, _ = x.shape
    h = jnp.einsum("nhwc,cd->nhwd", x, p["w1"])
    h = (h - p["m1"]) / jnp.sqrt(p["v1"] + eps) * p["g1"] + p["be1"]
    h = jnp.clip(h, 0.0, 6.0)
    hp = jnp.pad(h, ((0, 0), (1, 1), (1, 1), (0, 0)))
    Ho = (H + 2 - 3) // stride + 1
    Wo = (W + 2 - 3) // stride + 1
    acc = jnp.zeros((N, Ho, Wo, h.shape[-1]), jnp.float32)
    for di in range(3):
        for dj in range(3):
            acc = acc + hp[:, di:di + Ho * stride:stride,
                           dj:dj + Wo * stride:stride, :] * p["wdw"][di, dj]
    acc = (acc - p["m2"]) / jnp.sqrt(p["v2"] + eps) * p["g2"] + p["be2"]
    acc = jnp.clip(acc, 0.0, 6.0)
    y = jnp.einsum("nhwd,de->nhwe", acc, p["w3"])
    y = (y - p["m3"]) / jnp.sqrt(p["v3"] + eps) * p["g3"] + p["be3"]
    if use_res:
        y = y + x
    return jnp.transpose(y, (0, 3, 1, 2))


if __name__ == "__main__":
    # Module config: InvertedResidual(inp=4, oup=4, stride=1, expand_ratio=6)
    inp, oup, stride, expand_ratio = 4, 4, 1, 6
    use_res = (stride == 1 and inp == oup)

    key = jax.random.PRNGKey(0)
    kp, kx = jax.random.split(key)
    params, hidden = make_params(kp, inp, oup, expand_ratio)
    folded = fold_bn(params, hidden, oup)

    x = jax.random.normal(kx, (2, inp, 16, 16), jnp.float32)   # NCHW like PyTorch

    out = inverted_residual(x, folded, stride=stride, use_res=use_res)
    out = jax.block_until_ready(out)

    ref = ref_forward(x, params, stride=stride, use_res=use_res)
    assert out.shape == ref.shape == (2, oup, 16, 16)
    assert jnp.allclose(out, ref, atol=1e-3, rtol=1e-3), \
        float(jnp.max(jnp.abs(out - ref)))

    print("KERNEL_OK")
</pallas_src>

<mosaic_0001>
module attributes {stable_mosaic.version = 11 : i64} {
  func.func @_inverted_residual_kernel(%arg0: i32, %arg1: memref<1x4x256xf32, #tpu.memory_space<vmem>>, %arg2: memref<24x4xf32, #tpu.memory_space<vmem>>, %arg3: memref<24x1xf32, #tpu.memory_space<vmem>>, %arg4: memref<24x9xf32, #tpu.memory_space<vmem>>, %arg5: memref<24x1xf32, #tpu.memory_space<vmem>>, %arg6: memref<4x24xf32, #tpu.memory_space<vmem>>, %arg7: memref<4x1xf32, #tpu.memory_space<vmem>>, %arg8: memref<1x4x256xf32, #tpu.memory_space<vmem>>) attributes {dimension_semantics = [#tpu.dimension_semantics<parallel>], iteration_bounds = array<i64: 2>, scalar_prefetch = 0 : i64, scratch_operands = 0 : i64, tpu.core_type = #tpu.core_type<tc>, window_params = [{transform_indices = @transform_0, window_bounds = array<i64: 1, 4, 256>}, {pipeline_mode = #tpu.pipeline_mode<synchronous>, transform_indices = @transform_1, window_bounds = array<i64: 24, 4>}, {pipeline_mode = #tpu.pipeline_mode<synchronous>, transform_indices = @transform_2, window_bounds = array<i64: 24, 1>}, {pipeline_mode = #tpu.pipeline_mode<synchronous>, transform_indices = @transform_3, window_bounds = array<i64: 24, 9>}, {pipeline_mode = #tpu.pipeline_mode<synchronous>, transform_indices = @transform_4, window_bounds = array<i64: 24, 1>}, {pipeline_mode = #tpu.pipeline_mode<synchronous>, transform_indices = @transform_5, window_bounds = array<i64: 4, 24>}, {pipeline_mode = #tpu.pipeline_mode<synchronous>, transform_indices = @transform_6, window_bounds = array<i64: 4, 1>}, {transform_indices = @transform_7, window_bounds = array<i64: 1, 4, 256>}]} {
    %c0 = arith.constant 0 : index
    %c0_0 = arith.constant 0 : index
    %c0_1 = arith.constant 0 : index
    %0 = vector.load %arg1[%c0, %c0_0, %c0_1] : memref<1x4x256xf32, #tpu.memory_space<vmem>>, vector<1x4x256xf32>
    %1 = vector.shape_cast %0 : vector<1x4x256xf32> to vector<4x256xf32>
    %c0_2 = arith.constant 0 : index
    %c0_3 = arith.constant 0 : index
    %2 = vector.load %arg2[%c0_2, %c0_3] : memref<24x4xf32, #tpu.memory_space<vmem>>, vector<24x4xf32>
    %cst = arith.constant dense<0.000000e+00> : vector<24x256xf32>
    %3 = tpu.matmul %2, %1, %cst {dimension_numbers = #tpu.dot_dimension_numbers<[1], [0], [0], [1], [0, 0, 1, 1], [], []>} : vector<24x4xf32>, vector<4x256xf32>, vector<24x256xf32> -> vector<24x256xf32>
    %c0_4 = arith.constant 0 : index
    %c0_5 = arith.constant 0 : index
    %4 = vector.load %arg3[%c0_4, %c0_5] : memref<24x1xf32, #tpu.memory_space<vmem>>, vector<24x1xf32>
    %5 = vector.broadcast %4 : vector<24x1xf32> to vector<24x256xf32>
    %6 = arith.addf %3, %5 : vector<24x256xf32>
    %cst_6 = arith.constant 0.000000e+00 : f32
    %cst_7 = arith.constant 6.000000e+00 : f32
    %7 = vector.broadcast %cst_6 : f32 to vector<24x256xf32>
    %8 = arith.maximumf %7, %6 : vector<24x256xf32>
    %9 = vector.broadcast %cst_7 : f32 to vector<24x256xf32>
    %10 = arith.minimumf %9, %8 : vector<24x256xf32>
    %c0_8 = arith.constant 0 : index
    %c0_9 = arith.constant 0 : index
    %11 = vector.load %arg4[%c0_8, %c0_9] : memref<24x9xf32, #tpu.memory_space<vmem>>, vector<24x9xf32>
    %cst_10 = arith.constant 0.000000e+00 : f32
    %12 = vector.broadcast %cst_10 : f32 to vector<24x17xf32>
    %13 = tpu.concatenate %12, %10, %12 in 1 : vector<24x17xf32>, vector<24x256xf32>, vector<24x17xf32> -> vector<24x290xf32>
    %14 = tpu.iota {dimensions = array<i32: 1>} : vector<1x256xi32>
    %c16_i32 = arith.constant 16 : i32
    %c0_i32 = arith.constant 0 : i32
    %15 = arith.cmpi eq, %c16_i32, %c0_i32 : i32
    %c1_i32 = arith.constant 1 : i32
    %16 = arith.select %15, %c1_i32, %c16_i32 : i32
    %17 = vector.broadcast %16 : i32 to vector<1x256xi32>
    %18 = arith.remsi %14, %17 : vector<1x256xi32>
    %c0_i32_11 = arith.constant 0 : i32
    %19 = vector.broadcast %c0_i32_11 : i32 to vector<1x256xi32>
    %20 = arith.cmpi ne, %18, %19 : vector<1x256xi32>
    %c0_i32_12 = arith.constant 0 : i32
    %21 = vector.broadcast %c0_i32_12 : i32 to vector<1x256xi32>
    %22 = arith.cmpi slt, %18, %21 : vector<1x256xi32>
    %c0_i32_13 = arith.constant 0 : i32
    %23 = arith.cmpi slt, %16, %c0_i32_13 : i32
    %24 = vector.broadcast %23 : i1 to vector<1x256xi1>
    %25 = vector.broadcast %24 : vector<1x256xi1> to vector<1x256xi1>
    %26 = arith.xori %22, %25 : vector<1x256xi1>
    %27 = arith.andi %26, %20 : vector<1x256xi1>
    %28 = vector.broadcast %16 : i32 to vector<1x256xi32>
    %29 = arith.addi %18, %28 : vector<1x256xi32>
    %30 = arith.select %27, %29, %18 : vector<1x256xi1>, vector<1x256xi32>
    %c1_i32_14 = arith.constant 1 : i32
    %31 = vector.broadcast %c1_i32_14 : i32 to vector<1x256xi32>
    %32 = arith.cmpi sge, %30, %31 : vector<1x256xi32>
    %c14_i32 = arith.constant 14 : i32
    %33 = vector.broadcast %c14_i32 : i32 to vector<1x256xi32>
    %34 = arith.cmpi sle, %30, %33 : vector<1x256xi32>
    %cst_15 = arith.constant 0.000000e+00 : f32
    %35 = vector.broadcast %cst_15 : f32 to vector<24x256xf32>
    %36 = vector.extract_strided_slice %13 {offsets = [0, 0], sizes = [24, 256], strides = [1, 1]} : vector<24x290xf32> to vector<24x256xf32>
    %cst_16 = arith.constant 0.000000e+00 : f32
    %37 = vector.shape_cast %32 : vector<1x256xi1> to vector<1x256xi1>
    %38 = vector.broadcast %37 : vector<1x256xi1> to vector<24x256xi1>
    %39 = vector.broadcast %cst_16 : f32 to vector<24x256xf32>
    %40 = arith.select %38, %36, %39 : vector<24x256xi1>, vector<24x256xf32>
    %41 = vector.extract_strided_slice %11 {offsets = [0, 0], sizes = [24, 1], strides = [1, 1]} : vector<24x9xf32> to vector<24x1xf32>
    %42 = vector.broadcast %41 : vector<24x1xf32> to vector<24x256xf32>
    %43 = arith.mulf %40, %42 : vector<24x256xf32>
    %44 = arith.addf %35, %43 : vector<24x256xf32>
    %45 = vector.extract_strided_slice %13 {offsets = [0, 1], sizes = [24, 256], strides = [1, 1]} : vector<24x290xf32> to vector<24x256xf32>
    %46 = vector.extract_strided_slice %11 {offsets = [0, 1], sizes = [24, 1], strides = [1, 1]} : vector<24x9xf32> to vector<24x1xf32>
    %47 = vector.broadcast %46 : vector<24x1xf32> to vector<24x256xf32>
    %48 = arith.mulf %45, %47 : vector<24x256xf32>
    %49 = arith.addf %44, %48 : vector<24x256xf32>
    %50 = vector.extract_strided_slice %13 {offsets = [0, 2], sizes = [24, 256], strides = [1, 1]} : vector<24x290xf32> to vector<24x256xf32>
    %cst_17 = arith.constant 0.000000e+00 : f32
    %51 = vector.shape_cast %34 : vector<1x256xi1> to vector<1x256xi1>
    %52 = vector.broadcast %51 : vector<1x256xi1> to vector<24x256xi1>
    %53 = vector.broadcast %cst_17 : f32 to vector<24x256xf32>
    %54 = arith.select %52, %50, %53 : vector<24x256xi1>, vector<24x256xf32>
    %55 = vector.extract_strided_slice %11 {offsets = [0, 2], sizes = [24, 1], strides = [1, 1]} : vector<24x9xf32> to vector<24x1xf32>
    %56 = vector.broadcast %55 : vector<24x1xf32> to vector<24x256xf32>
    %57 = arith.mulf %54, %56 : vector<24x256xf32>
    %58 = arith.addf %49, %57 : vector<24x256xf32>
    %59 = vector.extract_strided_slice %13 {offsets = [0, 16], sizes = [24, 256], strides = [1, 1]} : vector<24x290xf32> to vector<24x256xf32>
    %cst_18 = arith.constant 0.000000e+00 : f32
    %60 = vector.shape_cast %32 : vector<1x256xi1> to vector<1x256xi1>
    %61 = vector.broadcast %60 : vector<1x256xi1> to vector<24x256xi1>
    %62 = vector.broadcast %cst_18 : f32 to vector<24x256xf32>
    %63 = arith.select %61, %59, %62 : vector<24x256xi1>, vector<24x256xf32>
    %64 = vector.extract_strided_slice %11 {offsets = [0, 3], sizes = [24, 1], strides = [1, 1]} : vector<24x9xf32> to vector<24x1xf32>
    %65 = vector.broadcast %64 : vector<24x1xf32> to vector<24x256xf32>
    %66 = arith.mulf %63, %65 : vector<24x256xf32>
    %67 = arith.addf %58, %66 : vector<24x256xf32>
    %68 = vector.extract_strided_slice %13 {offsets = [0, 17], sizes = [24, 256], strides = [1, 1]} : vector<24x290xf32> to vector<24x256xf32>
    %69 = vector.extract_strided_slice %11 {offsets = [0, 4], sizes = [24, 1], strides = [1, 1]} : vector<24x9xf32> to vector<24x1xf32>
    %70 = vector.broadcast %69 : vector<24x1xf32> to vector<24x256xf32>
    %71 = arith.mulf %68, %70 : vector<24x256xf32>
    %72 = arith.addf %67, %71 : vector<24x256xf32>
    %73 = vector.extract_strided_slice %13 {offsets = [0, 18], sizes = [24, 256], strides = [1, 1]} : vector<24x290xf32> to vector<24x256xf32>
    %cst_19 = arith.constant 0.000000e+00 : f32
    %74 = vector.shape_cast %34 : vector<1x256xi1> to vector<1x256xi1>
    %75 = vector.broadcast %74 : vector<1x256xi1> to vector<24x256xi1>
    %76 = vector.broadcast %cst_19 : f32 to vector<24x256xf32>
    %77 = arith.select %75, %73, %76 : vector<24x256xi1>, vector<24x256xf32>
    %78 = vector.extract_strided_slice %11 {offsets = [0, 5], sizes = [24, 1], strides = [1, 1]} : vector<24x9xf32> to vector<24x1xf32>
    %79 = vector.broadcast %78 : vector<24x1xf32> to vector<24x256xf32>
    %80 = arith.mulf %77, %79 : vector<24x256xf32>
    %81 = arith.addf %72, %80 : vector<24x256xf32>
    %82 = vector.extract_strided_slice %13 {offsets = [0, 32], sizes = [24, 256], strides = [1, 1]} : vector<24x290xf32> to vector<24x256xf32>
    %cst_20 = arith.constant 0.000000e+00 : f32
    %83 = vector.shape_cast %32 : vector<1x256xi1> to vector<1x256xi1>
    %84 = vector.broadcast %83 : vector<1x256xi1> to vector<24x256xi1>
    %85 = vector.broadcast %cst_20 : f32 to vector<24x256xf32>
    %86 = arith.select %84, %82, %85 : vector<24x256xi1>, vector<24x256xf32>
    %87 = vector.extract_strided_slice %11 {offsets = [0, 6], sizes = [24, 1], strides = [1, 1]} : vector<24x9xf32> to vector<24x1xf32>
    %88 = vector.broadcast %87 : vector<24x1xf32> to vector<24x256xf32>
    %89 = arith.mulf %86, %88 : vector<24x256xf32>
    %90 = arith.addf %81, %89 : vector<24x256xf32>
    %91 = vector.extract_strided_slice %13 {offsets = [0, 33], sizes = [24, 256], strides = [1, 1]} : vector<24x290xf32> to vector<24x256xf32>
    %92 = vector.extract_strided_slice %11 {offsets = [0, 7], sizes = [24, 1], strides = [1, 1]} : vector<24x9xf32> to vector<24x1xf32>
    %93 = vector.broadcast %92 : vector<24x1xf32> to vector<24x256xf32>
    %94 = arith.mulf %91, %93 : vector<24x256xf32>
    %95 = arith.addf %90, %94 : vector<24x256xf32>
    %96 = vector.extract_strided_slice %13 {offsets = [0, 34], sizes = [24, 256], strides = [1, 1]} : vector<24x290xf32> to vector<24x256xf32>
    %cst_21 = arith.constant 0.000000e+00 : f32
    %97 = vector.shape_cast %34 : vector<1x256xi1> to vector<1x256xi1>
    %98 = vector.broadcast %97 : vector<1x256xi1> to vector<24x256xi1>
    %99 = vector.broadcast %cst_21 : f32 to vector<24x256xf32>
    %100 = arith.select %98, %96, %99 : vector<24x256xi1>, vector<24x256xf32>
    %101 = vector.extract_strided_slice %11 {offsets = [0, 8], sizes = [24, 1], strides = [1, 1]} : vector<24x9xf32> to vector<24x1xf32>
    %102 = vector.broadcast %101 : vector<24x1xf32> to vector<24x256xf32>
    %103 = arith.mulf %100, %102 : vector<24x256xf32>
    %104 = arith.addf %95, %103 : vector<24x256xf32>
    %c0_22 = arith.constant 0 : index
    %c0_23 = arith.constant 0 : index
    %105 = vector.load %arg5[%c0_22, %c0_23] : memref<24x1xf32, #tpu.memory_space<vmem>>, vector<24x1xf32>
    %106 = vector.broadcast %105 : vector<24x1xf32> to vector<24x256xf32>
    %107 = arith.addf %104, %106 : vector<24x256xf32>
    %cst_24 = arith.constant 0.000000e+00 : f32
    %cst_25 = arith.constant 6.000000e+00 : f32
    %108 = vector.broadcast %cst_24 : f32 to vector<24x256xf32>
    %109 = arith.maximumf %108, %107 : vector<24x256xf32>
    %110 = vector.broadcast %cst_25 : f32 to vector<24x256xf32>
    %111 = arith.minimumf %110, %109 : vector<24x256xf32>
    %c0_26 = arith.constant 0 : index
    %c0_27 = arith.constant 0 : index
    %112 = vector.load %arg6[%c0_26, %c0_27] : memref<4x24xf32, #tpu.memory_space<vmem>>, vector<4x24xf32>
    %cst_28 = arith.constant dense<0.000000e+00> : vector<4x256xf32>
    %113 = tpu.matmul %112, %111, %cst_28 {dimension_numbers = #tpu.dot_dimension_numbers<[1], [0], [0], [1], [0, 0, 1, 1], [], []>} : vector<4x24xf32>, vector<24x256xf32>, vector<4x256xf32> -> vector<4x256xf32>
    %c0_29 = arith.constant 0 : index
    %c0_30 = arith.constant 0 : index
    %114 = vector.load %arg7[%c0_29, %c0_30] : memref<4x1xf32, #tpu.memory_space<vmem>>, vector<4x1xf32>
    %115 = vector.broadcast %114 : vector<4x1xf32> to vector<4x256xf32>
    %116 = arith.addf %113, %115 : vector<4x256xf32>
    %117 = arith.addf %116, %1 : vector<4x256xf32>
    %c0_31 = arith.constant 0 : index
    %c0_32 = arith.constant 0 : index
    %c0_33 = arith.constant 0 : index
    %118 = vector.load %arg8[%c0_31, %c0_32, %c0_33] : memref<1x4x256xf32, #tpu.memory_space<vmem>>, vector<1x4x256xf32>
    %119 = vector.shape_cast %118 : vector<1x4x256xf32> to vector<4x256xf32>
    %120 = vector.shape_cast %117 : vector<4x256xf32> to vector<1x4x256xf32>
    tpu.vector_store %arg8[%c0_31, %c0_32, %c0_33], %120 {strides = array<i32>} : memref<1x4x256xf32, #tpu.memory_space<vmem>>, vector<1x4x256xf32>,
    return
  }
  func.func @transform_0(%arg0: i32) -> (i32, i32, i32) {
    %c0_i32 = arith.constant 0 : i32
    %c0_i32_0 = arith.constant 0 : i32
    %c0_i32_1 = arith.constant 0 : i32
    return %arg0, %c0_i32, %c0_i32_0 : i32, i32, i32
  }
  func.func @transform_1(%arg0: i32) -> (i32, i32) {
    %c0_i32 = arith.constant 0 : i32
    %c0_i32_0 = arith.constant 0 : i32
    %c0_i32_1 = arith.constant 0 : i32
    return %c0_i32, %c0_i32_0 : i32, i32
  }
  func.func @transform_2(%arg0: i32) -> (i32, i32) {
    %c0_i32 = arith.constant 0 : i32
    %c0_i32_0 = arith.constant 0 : i32
    %c0_i32_1 = arith.constant 0 : i32
    return %c0_i32, %c0_i32_0 : i32, i32
  }
  func.func @transform_3(%arg0: i32) -> (i32, i32) {
    %c0_i32 = arith.constant 0 : i32
    %c0_i32_0 = arith.constant 0 : i32
    %c0_i32_1 = arith.constant 0 : i32
    return %c0_i32, %c0_i32_0 : i32, i32
  }
  func.func @transform_4(%arg0: i32) -> (i32, i32) {
    %c0_i32 = arith.constant 0 : i32
    %c0_i32_0 = arith.constant 0 : i32
    %c0_i32_1 = arith.constant 0 : i32
    return %c0_i32, %c0_i32_0 : i32, i32
  }
  func.func @transform_5(%arg0: i32) -> (i32, i32) {
    %c0_i32 = arith.constant 0 : i32
    %c0_i32_0 = arith.constant 0 : i32
    %c0_i32_1 = arith.constant 0 : i32
    return %c0_i32, %c0_i32_0 : i32, i32
  }
  func.func @transform_6(%arg0: i32) -> (i32, i32) {
    %c0_i32 = arith.constant 0 : i32
    %c0_i32_0 = arith.constant 0 : i32
    %c0_i32_1 = arith.constant 0 : i32
    return %c0_i32, %c0_i32_0 : i32, i32
  }
  func.func @transform_7(%arg0: i32) -> (i32, i32, i32) {
    %c0_i32 = arith.constant 0 : i32
    %c0_i32_0 = arith.constant 0 : i32
    %c0_i32_1 = arith.constant 0 : i32
    return %arg0, %c0_i32, %c0_i32_0 : i32, i32, i32
  }
}

</mosaic_0001>

<bundles_post_ra>
// kernel: tpu_custom_call.1
= control target key start
LH: loop header
LB: loop body
LE: loop exit
PB: predicated region body
PF: predicated region fallthrough
CT: control target
= control target key end

     0   :  { %12 = vsyncpa [#allocation3], 0  ;;  %s2081_s0 = inlined_call_operand.vmem [shape: f32[2,4,256], index: 0, kind: input, shape index: {}]   ;;  %s2082_s1 = inlined_call_operand.vmem [shape: f32[24,4], index: 1, kind: input, shape index: {}]   ;;  %s2083_s2 = inlined_call_operand.vmem [shape: f32[24,1], index: 2, kind: input, shape index: {}]   ;;  %s2084_s3 = inlined_call_operand.vmem [shape: f32[24,9], index: 3, kind: input, shape index: {}]   ;;  %s2085_s4 = inlined_call_operand.vmem [shape: f32[24,1], index: 4, kind: input, shape index: {}]   ;;  %s2086_s5 = inlined_call_operand.vmem [shape: f32[4,24], index: 5, kind: input, shape index: {}]   ;;  %s2087_s6 = inlined_call_operand.vmem [shape: f32[4,1], index: 6, kind: input, shape index: {}]   ;;  %s2088_s7 = inlined_call_operand.hbm [shape: f32[2,4,256], index: 7, kind: output, shape index: {}]  }
   0x1   :  { %14 = vsyncpa [#allocation3 + $0x1], 0  ;;  %s1464_s24 = smov 0   ;;  %s1466_s25 = smov 0  }
   0x2   :  { %s1468_s26 = smov 0   ;;  %s1470_s27 = smov 0  }
   0x3 LB: > { %s1485_s28 = sadd.s32 4294967295, %s1402_s27   ;;  %s1235_s29 = sadd.s32 4294967294, %s1402_s27   ;;  %s1402_s27 = sphi %s1470_s27, %s2102_s27   ;;  %s1398_s26 = sphi %s1468_s26, %s2101_s26   ;;  %s1394_s25 = sphi %s1466_s25, %s2100_s25   ;;  %s1390_s24 = sphi %s1464_s24, %s2099_s24  }
   0x4   : > { %s1489_s30 = sadd.s32 1, %s1402_s27   ;;  %s179_s8 = sadd.s32 1, %s1398_s26 }
   0x5   : > { %s176_s9 = ssub.s32 %s1402_s27, %s1489_s30  ;;  %p189_p0 = scmp.ne.s32.totalorder %s1398_s26, %s1394_s25 }
   0x6   : > { %p177_p1 = scmp.eq.s32.totalorder %s176_s9, 0  ;;  %p190_p2 = scmp.eq.s32.totalorder %s1485_s28, 1 }
   0x7   : > { %p195_p3 = scmp.ne.s32.totalorder %s1394_s25, %s1390_s24  ;;  %p196_p4 = scmp.eq.s32.totalorder %s1235_s29, 1 }
   0x8   : > { %s1500_s10 = scalar_select %p177_p1, %s1398_s26, %s179_s8  }
   0x9   : > { %p1502_p5 = por %p190_p2, %p189_p0  ;;  %p1506_p6 = por %p196_p4, %p195_p3 }
   0xa   : > { %p1238_p7 = scmp.ge.s32.totalorder %s1402_s27, 1  ;;  %p240_p8 = scmp.lt.s32.totalorder %s1402_s27, 3 }
   0xc   : > { %p241_p9 = pnand %p1238_p7, %p240_p8 }
   0xd   : > { %p272_p10 = scmp.lt.s32.totalorder (!%p241_p9), %s1485_s28, 1  ;;  %v1404_v0 = vmov (!%p241_p9), 0.0   ;;  %v1516_v1 = vld [vmem:[%s2084_s3 + $0x8] sm:$0xff] (!%p241_p9)  ;;  %v1405_v2 = vmov (!%p241_p9), 1   ;;  %v1406_v3 = vmov (!%p241_p9), 0   ;;  %v1524_v4 = vld [vmem:[%s2084_s3 + $0x10] sm:$0xff] (!%p241_p9) }
   0xe   : > { %244 = sbr.rel (%p241_p9) target bundleno = 872 (0x368), region = 48  ;;  %380 = vmatprep.mubr.f32.mxu0 (!%p241_p9), %v1404_v0  ;;  %1146 = vmatprep.mubr.f32.mxu1 (!%p241_p9), %v1404_v0  ;;  %v283_v5 = vld [vmem:[%s2083_s2 + $0x10] sm:$0xff] (!%p241_p9)  ;;  %vm311_vm0 = vcmask (!%p241_p9), 1043456   ;;  %v278_v8 = vld [vmem:[%s2082_s1] sm:$0xff] (!%p241_p9)  ;;  %vm301_vm1 = vcmask (!%p241_p9), 31744   ;;  %v1407_v10 = vmov (!%p241_p9), 4  }
   0xf   : > { %1319 = vset.pattern.permute.xlu0 (!%p241_p9), %v1405_v2  ;;  %1317 = vset.pattern.permute.xlu1 (!%p241_p9), %v1406_v3  ;;  %v411_v9 = vld [vmem:[%s2084_s3] sm:$0xff] (!%p241_p9)  ;;  %v279_v11 = vld [vmem:[%s2082_s1 + $0x8] sm:$0xff] (!%p241_p9)  ;;  %v280_v12 = vld [vmem:[%s2082_s1 + $0x10] sm:$0xff] (!%p241_p9)  ;;  %v1408_v13 = vmov (!%p241_p9), 7   ;;  %v1409_v14 = vmov (!%p241_p9), 2   ;;  %v1410_v15 = vmov (!%p241_p9), 3  }
  0x10   : > { %524 = vperm.xlu0 (!%p241_p9), %1319, %v1516_v1   ;;  %296 = vperm.xlu1 (!%p241_p9), %1317, %v283_v5   ;;  %v1411_v16 = vmov (!%p241_p9), 8   ;;  %v281_v17 = vld [vmem:[%s2083_s2] sm:$0xff] (!%p241_p9)  ;;  %v282_v18 = vld [vmem:[%s2083_s2 + $0x8] sm:$0xff] (!%p241_p9)  ;;  %v1412_v19 = vmov (!%p241_p9), 5   ;;  %v1413_v21 = vmov (!%p241_p9), 6   ;;  %v1037_v22 = vld [vmem:[%s2085_s4 + $0x10] sm:$0xff] (!%p241_p9) }
  0x11   : > { %v1035_v20 = vld [vmem:[%s2085_s4] sm:$0xff] (!%p241_p9)  ;;  %v1036_v23 = vld [vmem:[%s2085_s4 + $0x8] sm:$0xff] (!%p241_p9)  ;;  %vm432_vm2 = vcmask (!%p241_p9), 138240   ;;  %s1416_s17 = smov (!%p241_p9), 126   ;;  %s1417_s18 = smov (!%p241_p9), 96   ;;  %vm614_vm3 = vcmask (!%p241_p9), 1031168  }
  0x12   : > { %s1418_s19 = smov (!%p241_p9), 112   ;;  %s1419_s20 = smov (!%p241_p9), 94   ;;  %vm675_vm4 = vcmask (!%p241_p9), 916480   ;;  %vm803_vm5 = vcmask (!%p241_p9), 900096   ;;  %vm864_vm6 = vcmask (!%p241_p9), 785408   ;;  %vm992_vm7 = vcmask (!%p241_p9), 769024  }
  0x13   : > { %s1420_s21 = smov (!%p241_p9), 95   ;;  %s1421_s22 = smov (!%p241_p9), 127   ;;  %vm567_vm12 = vcmask (!%p241_p9), 1039360   ;;  %vm766_vm13 = vcmask (!%p241_p9), 908288   ;;  %vm955_vm14 = vcmask (!%p241_p9), 777216   ;;  %vm1078_vm15 = vcmask (!%p241_p9), 195584  }
  0x14   : > { %528 = vperm.xlu0 (!%p241_p9), %1319, %v1524_v4   ;;  %1318 = vset.pattern.permute.xlu1 (!%p241_p9), %v1405_v2  ;;  %s1422_s29 = smov (!%p241_p9), 111  }
  0x15   : > { %s273_s15 = scalar_select %p272_p10, %s1485_s28, 1  ;;  %520 = vperm.xlu1 %1318, %v411_v9  }
  0x17   : > { %s1253_s16 = sshll.u32 %s273_s15, 3  ;;  %s1414_s15 = smov 17  }
  0x18   : > { %s1532_s23 = scalar_lea.vmem %s2081_s0, %s1253_s16  ;;  %1321 = vset.pattern.permute.xlu0 %v1407_v10  ;;  %s1415_s16 = smov 110  }
  0x19   : > { %v277_v6 = vld [vmem:[%s1532_s23] sm:$0xff]  ;;  %723 = vperm.xlu0 %1321, %v1516_v1   ;;  %1320 = vset.pattern.permute.xlu1 %v1407_v10 }
  0x1a   : > { %v1535_v7 = vcombine.high %v277_v6, %v277_v6  ;;  %719 = vperm.xlu1 %1320, %v411_v9  }
  0x1c   : > { %1242 = vmatprep.subr.msk.mxu0 %vm311_vm0, %v1535_v7 }
  0x1d   : > { %1243 = vmatpush1.msk.msra.mxu0 %vm311_vm0, %v277_v6  ;;  %727 = vperm.xlu0 %1321, %v1524_v4  }
  0x1e   : > { %1244 = vmatmul.mubr.msk.f32.vlgmr.msra.gmra.mrb[0].mxu0 %vm301_vm1, %v278_v8  ;;  %1322 = vset.pattern.permute.xlu1 %v1408_v13 }
  0x1f   : > { %386 = vmatprep.mubr.f32.mxu0 %v1404_v0  ;;  %908 = vperm.xlu1 %1322, %v411_v9  }
  0x21   : > { %1323 = vset.pattern.permute.xlu0 %v1408_v13 }
  0x22   : > { %1245 = vmatmul.mubr.msk.f32.gmra.mrb[2].mxu0 %vm301_vm1, %v279_v11  ;;  %912 = vperm.xlu0 %1323, %v1516_v1  }
  0x23   : > { %392 = vmatprep.mubr.f32.mxu0 %v1404_v0  ;;  %916 = vperm.xlu1 %1322, %v1524_v4  }
  0x26   : > { %1246 = vmatmul.mubr.msk.f32.gmra.mrb[4].mxu0 %vm301_vm1, %v280_v12  ;;  %1328 = vset.pattern.permute.xlu0 %v1409_v14 }
  0x27   : > { %642 = vperm.xlu0 %1328, %v1524_v4   ;;  %1324 = vset.pattern.permute.xlu1 %v1406_v3 }
  0x28   : > { %494 = vperm.xlu1 %1324, %v411_v9  }
  0x2b   : > { %1329 = vset.pattern.permute.xlu0 %v1410_v15 }
  0x2c   : > { %695 = vperm.xlu0 %1329, %v411_v9   ;;  %1325 = vset.pattern.permute.xlu1 %v1409_v14 }
  0x2d   : > { %634 = vperm.xlu1 %1325, %v411_v9  }
  0x30   : > { %703 = vperm.xlu0 %1329, %v1524_v4  }
  0x31   : > { %638 = vperm.xlu1 %1325, %v1516_v1  }
  0x34   : > { %1333 = vset.pattern.permute.xlu0 %v1411_v16 }
  0x35   : > { %1012 = vperm.xlu0 %1333, %v411_v9   ;;  %1326 = vset.pattern.permute.xlu1 %v1410_v15 }
  0x36   : > { %699 = vperm.xlu1 %1326, %v1516_v1  }
  0x39   : > { %1020 = vperm.xlu0 %1333, %v1524_v4  }
  0x3a   : > { %1327 = vset.pattern.permute.xlu1 %v1406_v3 }
  0x3b   : > { %504 = vperm.xlu1 %1327, %v1524_v4  }
  0x3d   : > { %1337 = vset.pattern.permute.xlu0 %v1406_v3 }
  0x3e   : > { %286 = vperm.xlu0 %1337, %v281_v17  }
  0x3f   : > { %1330 = vset.pattern.permute.xlu1 %v1412_v19 }
  0x40   : > { %823 = vperm.xlu1 %1330, %v411_v9  }
  0x42   : > { %291 = vperm.xlu0 %1337, %v282_v18  }
  0x44   : > { %827 = vperm.xlu1 %1330, %v1516_v1  }
  0x46   : > { %499 = vperm.xlu0 %1337, %v1516_v1  }
  0x48   : > { %1331 = vset.pattern.permute.xlu1 %v1413_v21 }
  0x49   : > { %884 = vperm.xlu1 %1331, %v411_v9  }
  0x4a   : > { %1040 = vperm.xlu0 %1337, %v1035_v20  }
  0x4d   : > { %888 = vperm.xlu1 %1331, %v1516_v1  }
  0x4e   : > { %1050 = vperm.xlu0 %1337, %v1037_v22  }
  0x51   : > { %1332 = vset.pattern.permute.xlu1 %v1412_v19 }
  0x52   : > { %831 = vperm.xlu1 %1332, %v1524_v4  }
  0x56   : > { %1334 = vset.pattern.permute.xlu1 %v1411_v16 }
  0x57   : > { %1016 = vperm.xlu1 %1334, %v1516_v1  }
  0x5b   : > { %1335 = vset.pattern.permute.xlu1 %v1413_v21 }
  0x5c   : > { %892 = vperm.xlu1 %1335, %v1524_v4  }
  0x60   : > { %1336 = vset.pattern.permute.xlu1 %v1406_v3 }
  0x61   : > { %1045 = vperm.xlu1 %1336, %v1036_v23  }
  0x8f   : > { %v1589_v24 = vpop.permute.xlu0 %524  ;;  %v297_v47 = vpop.permute.xlu1 %296 }
  0x93   : > { %v1591_v25 = vpop.permute.xlu0 %528 }
  0x94   : > { %v521_v61 = vpop.permute.xlu1 %520 }
  0x98   : > { %v1593_v26 = vpop.permute.xlu0 %723 }
  0x99   : > { %v1609_v62 = vpop.permute.xlu1 %719 }
  0x9c   : > { %v1595_v27 = vpop.permute.xlu0 %727 }
  0x9e   : > { %v1611_v63 = vpop.permute.xlu1 %908 }
  0xa1   : > { %v1597_v28 = vpop.permute.xlu0 %912 }
  0xa2   : > { %v1613_v0 = vpop.permute.xlu1 %916 }
  0xa6   : > { %v1599_v29 = vpop.permute.xlu0 %642 }
  0xa7   : > { %v1615_v1 = vpop.permute.xlu1 %494 }
  0xab   : > { %v1601_v30 = vpop.permute.xlu0 %695 }
  0xac   : > { %v1617_v2 = vpop.permute.xlu1 %634 }
  0xaf   : > { %v1603_v31 = vpop.permute.xlu0 %703 }
  0xb0   : > { %v1619_v3 = vpop.permute.xlu1 %638 }
  0xb4   : > { %v1605_v32 = vpop.permute.xlu0 %1012 }
  0xb5   : > { %v1621_v4 = vpop.permute.xlu1 %699 }
  0xb8   : > { %v1607_v33 = vpop.permute.xlu0 %1020 }
  0xba   : > { %v1623_v5 = vpop.permute.xlu1 %504 }
  0xbd   : > { %v287_v34 = vpop.permute.xlu0 %286 }
  0xbf   : > { %v1625_v6 = vpop.permute.xlu1 %823 }
  0xc1   : > { %v292_v40 = vpop.permute.xlu0 %291 }
  0xc3   : > { %v1627_v8 = vpop.permute.xlu1 %827 }
  0xc5   : > { %v1668_v20 = vpop.permute.xlu0 %499 }
  0xc8   : > { %v1629_v9 = vpop.permute.xlu1 %884 }
  0xc9   : > { %v1678_v22 = vpop.permute.xlu0 %1040 }
  0xcc   : > { %v1631_v10 = vpop.permute.xlu1 %888 }
  0xd1   : > { %v1633_v11 = vpop.permute.xlu1 %831 }
  0xd6   : > { %v1635_v12 = vpop.permute.xlu1 %1016 }
  0xdb   : > { %v1637_v13 = vpop.permute.xlu1 %892 }
  0xe0   : > { %v1639_v14 = vpop.permute.xlu1 %1045 }
  0xf1   : > { %v382_v35 = vpop.f32.mrb[0].mxu0 }
  0xf2   : > { %v383_v36 = vadd.f32 %v382_v35, %v287_v34  ;;  %v384_v37 = vpop.f32.mrb[1].mxu0 }
  0xf3   : > { %v385_v38 = vadd.f32 %v384_v37, %v287_v34  ;;  %v1687_v37 = vpop.permute.xlu0 %1050 }
  0xf4   : > { %v399_v39 = vmax.f32 %v383_v36, 0.0 }
  0xf5   : > { %v388_v41 = vpop.f32.mrb[2].mxu0  ;;  %v400_v43 = vmax.f32 %v385_v38, 0.0 }
  0xf6   : > { %v405_v42 = vmin.f32 %v399_v39, 6.0  ;;  %v389_v44 = vadd.f32 %v388_v41, %v292_v40  ;;  %v390_v45 = vpop.f32.mrb[3].mxu0 }
  0xf7   : > { %v391_v46 = vadd.f32 %v390_v45, %v292_v40  ;;  %v406_v50 = vmin.f32 %v400_v43, 6.0 }
  0xf8   : > { %v401_v48 = vmax.f32 %v389_v44, 0.0  ;;  %420 = vrot.lane.b32.xlu1 %v405_v42, %s1414_s15 }
  0xf9   : > { %v394_v49 = vpop.f32.mrb[4].mxu0  ;;  %v402_v52 = vmax.f32 %v391_v46, 0.0 }
  0xfa   : > { %v407_v51 = vmin.f32 %v401_v48, 6.0  ;;  %v395_v53 = vadd.f32 %v394_v49, %v297_v47  ;;  %v396_v54 = vpop.f32.mrb[5].mxu0 }
  0xfb   : > { %v397_v56 = vadd.f32 %v396_v54, %v297_v47  ;;  %v408_v57 = vmin.f32 %v402_v52, 6.0 }
  0xfc   : > { %424 = vrot.lane.b32.xlu0 %v407_v51, %s1414_s15  ;;  %422 = vrot.lane.b32.xlu1 %v406_v50, %s1414_s15  ;;  %v403_v55 = vmax.f32 %v395_v53, 0.0 }
  0xfd   : > { %v404_v59 = vmax.f32 %v397_v56, 0.0 }
  0xfe   : > { %v409_v58 = vmin.f32 %v403_v55, 6.0 }
  0xff   : > { %v410_v60 = vmin.f32 %v404_v59, 6.0 }
 0x100   : > { %426 = vrot.lane.b32.xlu1 %v408_v57, %s1414_s15 }
 0x104   : > { %428 = vrot.lane.b32.xlu1 %v409_v58, %s1414_s15 }
 0x108   : > { %430 = vrot.lane.b32.xlu1 %v410_v60, %s1414_s15  ;;  %s269_s15 = sand.u32 1, %s1394_s25  }
 0x16a   : > { %v421_v15 = vpop.permute.xlu1 %420 }
 0x16b   : > { %v1642_v16 = vsel %vm432_vm2, 0.0, %v421_v15 }
 0x16c   : > { %785 = vrot.lane.b32.xlu1 %v1642_v16, %s1415_s16  ;;  %596 = vrot.lane.b32.xlu0 %v1642_v16, %s1416_s17  ;;  %v919_v21 = vmul.f32 %v1611_v63, %v1642_v16  ;;  %v531_v34 = vmul.f32 %v521_v61, %v1642_v16  ;;  %v730_v35 = vmul.f32 %v1609_v62, %v1642_v16 }
 0x16e   : > { %v423_v17 = vpop.permute.xlu1 %422  ;;  %v425_v40 = vpop.permute.xlu0 %424 }
 0x16f   : > { %v448_v18 = vsel %vm432_vm2, %v423_v17, 0.0  ;;  %v1657_v19 = vsel %vm432_vm2, %v421_v15, %v423_v17  ;;  %v1697_v42 = vsel %vm432_vm2, 0.0, %v425_v40 }
 0x170   : > { %846 = vrot.lane.b32.xlu1 %v1642_v16, %s1417_s18  ;;  %657 = vrot.lane.b32.xlu0 %v1642_v16, %s1418_s19  ;;  %v533_v23 = vmul.f32 %v521_v61, %v448_v18  ;;  %v731_v36 = vmul.f32 %v1609_v62, %v1657_v19  ;;  %v921_v38 = vmul.f32 %v1611_v63, %v448_v18 }
 0x171   : > { %v532_v39 = vmul.f32 %v521_v61, %v1657_v19  ;;  %v732_v41 = vmul.f32 %v1609_v62, %v448_v18  ;;  %v920_v43 = vmul.f32 %v1611_v63, %v1657_v19  ;;  %v534_v47 = vmul.f32 %v1589_v24, %v1697_v42 }
 0x172   : > { %v427_v44 = vpop.permute.xlu1 %426  ;;  %v733_v48 = vmul.f32 %v1593_v26, %v1697_v42  ;;  %v922_v49 = vmul.f32 %v1597_v28, %v1697_v42 }
 0x173   : > { %v449_v45 = vsel %vm432_vm2, %v427_v44, 0.0  ;;  %v1716_v46 = vsel %vm432_vm2, %v425_v40, %v427_v44 }
 0x174   : > { %974 = vrot.lane.b32.xlu0 %v1642_v16, %s1419_s20  ;;  %600 = vrot.lane.b32.xlu1 %v448_v18, %s1416_s17  ;;  %v536_v50 = vmul.f32 %v1589_v24, %v449_v45  ;;  %v535_v51 = vmul.f32 %v1589_v24, %v1716_v46  ;;  %v734_v52 = vmul.f32 %v1593_v26, %v1716_v46 }
 0x175   : > { %v735_v53 = vmul.f32 %v1593_v26, %v449_v45  ;;  %v924_v54 = vmul.f32 %v1597_v28, %v449_v45  ;;  %v923_v55 = vmul.f32 %v1597_v28, %v1716_v46 }
 0x176   : > { %v429_v56 = vpop.permute.xlu1 %428 }
 0x177   : > { %v1757_v24 = vsel %vm432_vm2, 0.0, %v429_v56 }
 0x178   : > { %661 = vrot.lane.b32.xlu1 %v448_v18, %s1418_s19  ;;  %598 = vrot.lane.b32.xlu0 %v1657_v19, %s1416_s17  ;;  %v537_v17 = vmul.f32 %v1591_v25, %v1757_v24 }
 0x17a   : > { %v431_v26 = vpop.permute.xlu1 %430 }
 0x17b   : > { %v1768_v28 = vsel %vm432_vm2, %v429_v56, %v431_v26  ;;  %v450_v57 = vsel %vm432_vm2, %v431_v26, 0.0 }
 0x17c   : > { %789 = vrot.lane.b32.xlu1 %v448_v18, %s1415_s16  ;;  %659 = vrot.lane.b32.xlu0 %v1657_v19, %s1418_s19  ;;  %v538_v62 = vmul.f32 %v1591_v25, %v1768_v28 }
 0x180   : > { %850 = vrot.lane.b32.xlu1 %v448_v18, %s1417_s18  ;;  %787 = vrot.lane.b32.xlu0 %v1657_v19, %s1415_s16 }
 0x184   : > { %976 = vrot.lane.b32.xlu1 %v1657_v19, %s1419_s20  ;;  %848 = vrot.lane.b32.xlu0 %v1657_v19, %s1417_s18 }
 0x188   : > { %937 = vrot.lane.b32.xlu1 %v919_v21, %s1420_s21  ;;  %978 = vrot.lane.b32.xlu0 %v448_v18, %s1419_s20  ;;  %v738_v18 = vmul.f32 %v1595_v27, %v450_v57 }
 0x18c   : > { %553 = vrot.lane.b32.xlu1 %v533_v23, %s1421_s22  ;;  %549 = vrot.lane.b32.xlu0 %v531_v34, %s1421_s22  ;;  %v736_v34 = vmul.f32 %v1595_v27, %v1757_v24 }
 0x190   : > { %748 = vrot.lane.b32.xlu0 %v730_v35, %s1422_s29  ;;  %750 = vrot.lane.b32.xlu1 %v731_v36, %s1422_s29  ;;  %v926_v35 = vmul.f32 %v1613_v0, %v1768_v28 }
 0x194   : > { %941 = vrot.lane.b32.xlu1 %v921_v38, %s1420_s21  ;;  %551 = vrot.lane.b32.xlu0 %v532_v39, %s1421_s22 }
 0x198   : > { %602 = vrot.lane.b32.xlu1 %v1697_v42, %s1416_s17  ;;  %752 = vrot.lane.b32.xlu0 %v732_v41, %s1422_s29  ;;  %v539_v41 = vmul.f32 %v1591_v25, %v450_v57 }
 0x19c   : > { %663 = vrot.lane.b32.xlu1 %v1697_v42, %s1418_s19  ;;  %939 = vrot.lane.b32.xlu0 %v920_v43, %s1420_s21 }
 0x1a0   : > { %980 = vrot.lane.b32.xlu1 %v1697_v42, %s1419_s20  ;;  %791 = vrot.lane.b32.xlu0 %v1697_v42, %s1415_s16 }
 0x1a4   : > { %852 = vrot.lane.b32.xlu0 %v1697_v42, %s1417_s18  ;;  %606 = vrot.lane.b32.xlu1 %v449_v45, %s1416_s17 }
 0x1a8   : > { %667 = vrot.lane.b32.xlu1 %v449_v45, %s1418_s19  ;;  %604 = vrot.lane.b32.xlu0 %v1716_v46, %s1416_s17 }
 0x1ac   : > { %795 = vrot.lane.b32.xlu1 %v449_v45, %s1415_s16  ;;  %665 = vrot.lane.b32.xlu0 %v1716_v46, %s1418_s19 }
 0x1b0   : > { %856 = vrot.lane.b32.xlu1 %v449_v45, %s1417_s18  ;;  %793 = vrot.lane.b32.xlu0 %v1716_v46, %s1415_s16 }
 0x1b4   : > { %982 = vrot.lane.b32.xlu1 %v1716_v46, %s1419_s20  ;;  %854 = vrot.lane.b32.xlu0 %v1716_v46, %s1417_s18 }
 0x1b8   : > { %555 = vrot.lane.b32.xlu1 %v534_v47, %s1421_s22  ;;  %984 = vrot.lane.b32.xlu0 %v449_v45, %s1419_s20  ;;  %v1072_v45 = vld [vmem:[%s2087_s6] sm:$0xf]  ;;  %v451_v47 = vlaneseq }
 0x1bc   : > { %754 = vrot.lane.b32.xlu1 %v733_v48, %s1422_s29  ;;  %943 = vrot.lane.b32.xlu0 %v922_v49, %s1420_s21 }
 0x1c0   : > { %559 = vrot.lane.b32.xlu1 %v536_v50, %s1421_s22  ;;  %557 = vrot.lane.b32.xlu0 %v535_v51, %s1421_s22  ;;  %v452_v51 = vand.u32 127, %v451_v47 }
 0x1c4   : > { %756 = vrot.lane.b32.xlu1 %v734_v52, %s1422_s29  ;;  %758 = vrot.lane.b32.xlu0 %v735_v53, %s1422_s29 }
 0x1c8   : > { %947 = vrot.lane.b32.xlu1 %v924_v54, %s1420_s21  ;;  %945 = vrot.lane.b32.xlu0 %v923_v55, %s1420_s21  ;;  %v737_v54 = vmul.f32 %v1595_v27, %v1768_v28 }
 0x1cc   : > { %797 = vrot.lane.b32.xlu1 %v1757_v24, %s1415_s16  ;;  %608 = vrot.lane.b32.xlu0 %v1757_v24, %s1416_s17 }
 0x1d0   : > { %858 = vrot.lane.b32.xlu1 %v1757_v24, %s1417_s18  ;;  %669 = vrot.lane.b32.xlu0 %v1757_v24, %s1418_s19 }
 0x1d4   : > { %612 = vrot.lane.b32.xlu1 %v450_v57, %s1416_s17  ;;  %610 = vrot.lane.b32.xlu0 %v1768_v28, %s1416_s17  ;;  %s1254_s17 = sshll.u32 %s1485_s28, 7  ;;  %s1423_s28 = smov [#allocation2]  }
 0x1d5   : > { %s1344_s8 = sshll.u32 %s1423_s28, 4  ;;  %s1345_s8 = int_to_ptr.vmem [resolvable:$false] %s1344_s8 }
 0x1d6   : > { %s1346_s9 = scalar_lea.vmem %s1345_s8, 256 }
 0x1d8   : > { %673 = vrot.lane.b32.xlu1 %v450_v57, %s1418_s19  ;;  %671 = vrot.lane.b32.xlu0 %v1768_v28, %s1418_s19 }
 0x1dc   : > { %799 = vrot.lane.b32.xlu1 %v1768_v28, %s1415_s16  ;;  %801 = vrot.lane.b32.xlu0 %v450_v57, %s1415_s16  ;;  %s1239_s16 = sshll.u32 %s269_s15, 3 }
 0x1de   : > { %v597_v58 = vpop.permute.xlu0 %596  ;;  %v786_v59 = vpop.permute.xlu1 %785 }
 0x1e0   : > { %860 = vrot.lane.b32.xlu1 %v1768_v28, %s1417_s18  ;;  %862 = vrot.lane.b32.xlu0 %v450_v57, %s1417_s18  ;;  %s271_s18 = scalar_lea.vmem [#allocation2], %s1239_s16 }
 0x1e1   : > { %s1176_s19 = sshll.u32 %s271_s18, 4  ;;  %s2041_s19 = int_to_ptr.vmem [resolvable:$true] %s1176_s19 }
 0x1e2   : > { %v658_v60 = vpop.permute.xlu0 %657  ;;  %v847_v61 = vpop.permute.xlu1 %846  ;;  %p1347_p0 = scmp.lt.s32.totalorder %s2041_s19, %s1345_s8 }
 0x1e4   : > { %988 = vrot.lane.b32.xlu1 %v1768_v28, %s1419_s20  ;;  %563 = vrot.lane.b32.xlu0 %v538_v62, %s1421_s22  ;;  %v927_v62 = vmul.f32 %v1613_v0, %v450_v57 }
 0x1e6   : > { %v975_v63 = vpop.permute.xlu0 %974  ;;  %v601_v15 = vpop.permute.xlu1 %600 }
 0x1e8   : > { %561 = vrot.lane.b32.xlu1 %v537_v17, %s1421_s22  ;;  %764 = vrot.lane.b32.xlu0 %v738_v18, %s1422_s29  ;;  %v458_v17 = vand.u32 15, %v452_v51 }
 0x1ea   : > { %v599_v21 = vpop.permute.xlu0 %598  ;;  %v662_v23 = vpop.permute.xlu1 %661  ;;  %vm1838_vm8 = vcmp.ge.s32.totalorder %v458_v17, 1  ;;  %vm1847_vm10 = vcmp.le.s32.totalorder %v458_v17, 14 }
 0x1eb   : > { %v1798_v36 = vsel %vm614_vm3, %v597_v58, %v599_v21  ;;  %v1801_v38 = vsel %vm614_vm3, %v599_v21, %v601_v15  ;;  %v453_v58 = vadd.s32 128, %v452_v51 }
 0x1ec   : > { %760 = vrot.lane.b32.xlu1 %v736_v34, %s1422_s29  ;;  %951 = vrot.lane.b32.xlu0 %v926_v35, %s1420_s21 }
 0x1ed   : > { %v465_v27 = vand.u32 15, %v453_v58 }
 0x1ee   : > { %v660_v39 = vpop.permute.xlu0 %659  ;;  %v790_v40 = vpop.permute.xlu1 %789 }
 0x1ef   : > { %v676_v43 = vsel %vm675_vm4, %v658_v60, %v660_v39  ;;  %v677_v44 = vsel %vm675_vm4, %v660_v39, %v662_v23  ;;  %vm1842_vm9 = vcmp.ge.s32.totalorder %v465_v27, 1  ;;  %vm1851_vm11 = vcmp.le.s32.totalorder %v465_v27, 14 }
 0x1f0   : > { %565 = vrot.lane.b32.xlu1 %v539_v41, %s1421_s22  ;;  %986 = vrot.lane.b32.xlu0 %v1757_v24, %s1419_s20  ;;  %v486_v39 = vsel %vm1838_vm8, %v1642_v16, 0.0  ;;  %v627_v41 = vsel %vm1847_vm10, %v1798_v36, 0.0  ;;  %v688_v16 = vsel %vm1838_vm8, %v676_v43, 0.0  ;;  %s2039_s22 = scalar_lea.hbm %s2088_s7, %s1254_s17 }
 0x1f1   : > { %v507_v47 = vmul.f32 %v1615_v1, %v486_v39 }
 0x1f2   : > { %v788_v48 = vpop.permute.xlu0 %787  ;;  %v851_v49 = vpop.permute.xlu1 %850 }
 0x1f3   : > { %v1815_v50 = vsel %vm803_vm5, %v786_v59, %v788_v48  ;;  %v1818_v25 = vsel %vm803_vm5, %v788_v48, %v790_v40  ;;  %v487_v40 = vsel %vm1842_vm9, %v1657_v19, 0.0  ;;  %v689_v19 = vsel %vm1842_vm9, %v677_v44, 0.0 }
 0x1f4   : > { %990 = vrot.lane.b32.xlu1 %v450_v57, %s1419_s20  ;;  %1075 = vperm.xlu0 %1337, %v1072_v45   ;;  %v628_v45 = vsel %vm1851_vm11, %v1801_v38, 0.0  ;;  %v816_v44 = vsel %vm1847_vm10, %v1815_v50, 0.0 }
 0x1f5   : > { %v646_v38 = vmul.f32 %v1617_v2, %v628_v45 }
 0x1f6   : > { %v849_v52 = vpop.permute.xlu0 %848  ;;  %v977_v53 = vpop.permute.xlu1 %976 }
 0x1f7   : > { %v865_v55 = vsel %vm864_vm6, %v847_v61, %v849_v52  ;;  %v866_v56 = vsel %vm864_vm6, %v849_v52, %v851_v49  ;;  %v1826_v26 = vsel %vm992_vm7, %v975_v63, %v977_v53  ;;  %v925_v63 = vmul.f32 %v1613_v0, %v1757_v24 }
 0x1f8   : > { %762 = vrot.lane.b32.xlu1 %v737_v54, %s1422_s29  ;;  %v508_v49 = vmul.f32 %v1615_v1, %v487_v40  ;;  %v706_v1 = vmul.f32 %v1601_v30, %v688_v16  ;;  %s1162_s29 = scalar_lea.sflag [#allocation3], %s269_s15 }
 0x1fa   : > { %v979_v59 = vpop.permute.xlu0 %978  ;;  %v1829_v60 = vpop.permute.xlu1 %937 }
 0x1fb   : > { %v1833_v15 = vsel %vm992_vm7, %v977_v53, %v979_v59  ;;  %v645_v53 = vmul.f32 %v1617_v2, %v627_v41  ;;  %v707_v59 = vmul.f32 %v1601_v30, %v689_v19  ;;  %v878_v30 = vsel %vm1842_vm9, %v866_v56, 0.0 }
 0x1fc   : > { %953 = vrot.lane.b32.xlu1 %v927_v62, %s1420_s21  ;;  %v834_v41 = vmul.f32 %v1625_v6, %v816_v44  ;;  %v1005_v56 = vsel %vm1847_vm10, %v1826_v26, 0.0 }
 0x1fe   : > { %v550_v61 = vpop.permute.xlu0 %549  ;;  %v554_v18 = vpop.permute.xlu1 %553 }
 0x200   : > { %949 = vrot.lane.b32.xlu1 %v925_v63, %s1420_s21  ;;  %v877_v63 = vsel %vm1838_vm8, %v865_v55, 0.0  ;;  %v896_v55 = vmul.f32 %v1629_v9, %v878_v30 }
 0x202   : > { %v749_v35 = vpop.permute.xlu0 %748  ;;  %v751_v0 = vpop.permute.xlu1 %750 }
 0x203   : > { %v767_v39 = vsel %vm766_vm13, %v749_v35, %v751_v0  ;;  %v1006_v35 = vsel %vm1851_vm11, %v1833_v15, 0.0 }
 0x206   : > { %v552_v48 = vpop.permute.xlu0 %551  ;;  %v942_v51 = vpop.permute.xlu1 %941 }
 0x207   : > { %v568_v52 = vsel %vm567_vm12, %v550_v61, %v552_v48  ;;  %v569_v36 = vsel %vm567_vm12, %v552_v48, %v554_v18  ;;  %v817_v61 = vsel %vm1851_vm11, %v1818_v25, 0.0 }
 0x208   : > { %v580_v54 = vadd.f32 %v568_v52, %v507_v47  ;;  %v581_v58 = vadd.f32 %v569_v36, %v508_v49  ;;  %v835_v50 = vmul.f32 %v1625_v6, %v817_v61  ;;  %v895_v49 = vmul.f32 %v1629_v9, %v877_v63 }
 0x20a   : > { %v651_v62 = vadd.f32 %v645_v53, %v580_v54  ;;  %v652_v43 = vadd.f32 %v646_v38, %v581_v58  ;;  %v753_v17 = vpop.permute.xlu0 %752  ;;  %v603_v27 = vpop.permute.xlu1 %602  ;;  %v1023_v38 = vmul.f32 %v1605_v32, %v1005_v56  ;;  %v1024_v54 = vmul.f32 %v1605_v32, %v1006_v35 }
 0x20b   : > { %v768_v40 = vsel %vm766_vm13, %v751_v0, %v753_v17 }
 0x20c   : > { %v712_v2 = vadd.f32 %v706_v1, %v651_v62  ;;  %v713_v18 = vadd.f32 %v707_v59, %v652_v43 }
 0x20e   : > { %v780_v45 = vadd.f32 %v768_v40, %v713_v18  ;;  %v940_v47 = vpop.permute.xlu0 %939  ;;  %v779_v48 = vadd.f32 %v767_v39, %v712_v2  ;;  %v664_v25 = vpop.permute.xlu1 %663 }
 0x20f   : > { %v956_v53 = vsel %vm955_vm14, %v1829_v60, %v940_v47  ;;  %v957_v9 = vsel %vm955_vm14, %v940_v47, %v942_v51 }
 0x210   : > { %v841_v16 = vadd.f32 %v835_v50, %v780_v45  ;;  %v840_v19 = vadd.f32 %v834_v41, %v779_v48  ;;  %v488_v50 = vsel %vm1838_vm8, %v1697_v42, 0.0  ;;  %v489_v45 = vsel %vm1842_vm9, %v1716_v46, 0.0 }
 0x212   : > { %v901_v6 = vadd.f32 %v895_v49, %v840_v19  ;;  %v902_v0 = vadd.f32 %v896_v55, %v841_v16  ;;  %v792_v52 = vpop.permute.xlu0 %791  ;;  %v1901_v36 = vpop.permute.xlu1 %980  ;;  %v509_v55 = vmul.f32 %v1668_v20, %v488_v50  ;;  %v510_v16 = vmul.f32 %v1668_v20, %v489_v45 }
 0x214   : > { %v968_v58 = vadd.f32 %v956_v53, %v901_v6  ;;  %v969_v26 = vadd.f32 %v957_v9, %v902_v0 }
 0x216   : > { %v1908_v1 = vadd.f32 %v1023_v38, %v968_v58  ;;  %v1910_v59 = vadd.f32 %v1024_v54, %v969_v26  ;;  %v853_v15 = vpop.permute.xlu0 %852  ;;  %v607_v62 = vpop.permute.xlu1 %606 }
 0x21a   : > { %v605_v43 = vpop.permute.xlu0 %604  ;;  %v668_v17 = vpop.permute.xlu1 %667 }
 0x21b   : > { %v617_v32 = vsel %vm614_vm3, %v603_v27, %v605_v43  ;;  %v618_v39 = vsel %vm614_vm3, %v605_v43, %v607_v62 }
 0x21c   : > { %v629_v49 = vsel %vm1847_vm10, %v617_v32, 0.0  ;;  %v630_v27 = vsel %vm1851_vm11, %v618_v39, 0.0 }
 0x21d   : > { %v647_v53 = vmul.f32 %v1619_v3, %v629_v49  ;;  %v648_v20 = vmul.f32 %v1619_v3, %v630_v27 }
 0x21e   : > { %v666_v44 = vpop.permute.xlu0 %665  ;;  %v796_v61 = vpop.permute.xlu1 %795 }
 0x21f   : > { %v678_v47 = vsel %vm675_vm4, %v664_v25, %v666_v44  ;;  %v679_v48 = vsel %vm675_vm4, %v666_v44, %v668_v17 }
 0x220   : > { %v690_v42 = vsel %vm1838_vm8, %v678_v47, 0.0  ;;  %v691_v46 = vsel %vm1842_vm9, %v679_v48, 0.0 }
 0x221   : > { %v708_v54 = vmul.f32 %v1621_v4, %v690_v42  ;;  %v709_v58 = vmul.f32 %v1621_v4, %v691_v46 }
 0x222   : > { %v794_v2 = vpop.permute.xlu0 %793  ;;  %v857_v60 = vpop.permute.xlu1 %856 }
 0x223   : > { %v806_v25 = vsel %vm803_vm5, %v792_v52, %v794_v2  ;;  %v807_v19 = vsel %vm803_vm5, %v794_v2, %v796_v61 }
 0x224   : > { %v818_v52 = vsel %vm1847_vm10, %v806_v25, 0.0  ;;  %v819_v26 = vsel %vm1851_vm11, %v807_v19, 0.0 }
 0x225   : > { %v836_v2 = vmul.f32 %v1627_v8, %v818_v52 }
 0x226   : > { %v855_v18 = vpop.permute.xlu0 %854  ;;  %v983_v51 = vpop.permute.xlu1 %982 }
 0x227   : > { %v867_v62 = vsel %vm864_vm6, %v853_v15, %v855_v18  ;;  %v868_v43 = vsel %vm864_vm6, %v855_v18, %v857_v60  ;;  %v995_v18 = vsel %vm992_vm7, %v1901_v36, %v983_v51 }
 0x228   : > { %v879_v39 = vsel %vm1838_vm8, %v867_v62, 0.0  ;;  %v880_v50 = vsel %vm1842_vm9, %v868_v43, 0.0 }
 0x229   : > { %v897_v27 = vmul.f32 %v1631_v10, %v879_v39 }
 0x22a   : > { %v985_v63 = vpop.permute.xlu0 %984  ;;  %v556_v30 = vpop.permute.xlu1 %555 }
 0x22b   : > { %v996_v45 = vsel %vm992_vm7, %v983_v51, %v985_v63 }
 0x22c   : > { %v1008_v46 = vsel %vm1851_vm11, %v996_v45, 0.0  ;;  %v490_v45 = vsel %vm1838_vm8, %v1757_v24, 0.0 }
 0x22e   : > { %v944_v40 = vpop.permute.xlu0 %943  ;;  %v755_v41 = vpop.permute.xlu1 %754 }
 0x232   : > { %v558_v56 = vpop.permute.xlu0 %557  ;;  %v560_v35 = vpop.permute.xlu1 %559 }
 0x233   : > { %v570_v6 = vsel %vm567_vm12, %v556_v30, %v558_v56  ;;  %v571_v0 = vsel %vm567_vm12, %v558_v56, %v560_v35  ;;  %v837_v30 = vmul.f32 %v1627_v8, %v819_v26  ;;  %v1054_v35 = vadd.f32 %v1678_v22, %v1910_v59 }
 0x234   : > { %v582_v9 = vadd.f32 %v570_v6, %v509_v55  ;;  %v583_v38 = vadd.f32 %v571_v0, %v510_v16  ;;  %v898_v55 = vmul.f32 %v1631_v10, %v880_v50  ;;  %v1053_v10 = vadd.f32 %v1678_v22, %v1908_v1 }
 0x235   : > { %v1026_v0 = vmul.f32 %v1635_v12, %v1008_v46  ;;  %v1060_v52 = vmax.f32 %v1054_v35, 0.0 }
 0x236   : > { %v653_v17 = vadd.f32 %v647_v53, %v582_v9  ;;  %v654_v44 = vadd.f32 %v648_v20, %v583_v38  ;;  %v759_v61 = vpop.permute.xlu0 %758  ;;  %v757_v3 = vpop.permute.xlu1 %756  ;;  %v1059_v62 = vmax.f32 %v1053_v10, 0.0 }
 0x237   : > { %v769_v15 = vsel %vm766_vm13, %v755_v41, %v757_v3  ;;  %v770_v60 = vsel %vm766_vm13, %v757_v3, %v759_v61  ;;  %v1007_v41 = vsel %vm1847_vm10, %v995_v18, 0.0  ;;  %v1066_v1 = vmin.f32 %v1060_v52, 6.0 }
 0x238   : > { %v714_v32 = vadd.f32 %v708_v54, %v653_v17  ;;  %v715_v4 = vadd.f32 %v709_v58, %v654_v44  ;;  %v1025_v6 = vmul.f32 %v1635_v12, %v1007_v41  ;;  %v1065_v61 = vmin.f32 %v1059_v62, 6.0 }
 0x23a   : > { %v781_v47 = vadd.f32 %v769_v15, %v714_v32  ;;  %v782_v48 = vadd.f32 %v770_v60, %v715_v4  ;;  %v946_v8 = vpop.permute.xlu0 %945  ;;  %v948_v49 = vpop.permute.xlu1 %947 }
 0x23b   : > { %v958_v63 = vsel %vm955_vm14, %v944_v40, %v946_v8  ;;  %v959_v56 = vsel %vm955_vm14, %v946_v8, %v948_v49 }
 0x23c   : > { %v842_v16 = vadd.f32 %v836_v2, %v781_v47  ;;  %v843_v42 = vadd.f32 %v837_v30, %v782_v48 }
 0x23e   : > { %v903_v25 = vadd.f32 %v897_v27, %v842_v16  ;;  %v904_v36 = vadd.f32 %v898_v55, %v843_v42  ;;  %v609_v19 = vpop.permute.xlu0 %608  ;;  %v798_v51 = vpop.permute.xlu1 %797  ;;  %v491_v55 = vsel %vm1842_vm9, %v1768_v28, 0.0  ;;  %v511_v16 = vmul.f32 %v1623_v5, %v490_v45 }
 0x240   : > { %v970_v53 = vadd.f32 %v958_v63, %v903_v25  ;;  %v971_v20 = vadd.f32 %v959_v56, %v904_v36  ;;  %v512_v36 = vmul.f32 %v1623_v5, %v491_v55 }
 0x242   : > { %v1031_v9 = vadd.f32 %v1025_v6, %v970_v53  ;;  %v1032_v38 = vadd.f32 %v1026_v0, %v971_v20  ;;  %v670_v54 = vpop.permute.xlu0 %669  ;;  %v859_v58 = vpop.permute.xlu1 %858 }
 0x244   : > { %v1056_v40 = vadd.f32 %v1639_v14, %v1032_v38  ;;  %v1055_v26 = vadd.f32 %v1639_v14, %v1031_v9 }
 0x246   : > { %v611_v59 = vpop.permute.xlu0 %610  ;;  %v613_v43 = vpop.permute.xlu1 %612  ;;  %v1062_v17 = vmax.f32 %v1056_v40, 0.0  ;;  %v1061_v22 = vmax.f32 %v1055_v26, 0.0 }
 0x247   : > { %v619_v47 = vsel %vm614_vm3, %v609_v19, %v611_v59  ;;  %v620_v48 = vsel %vm614_vm3, %v611_v59, %v613_v43 }
 0x248   : > { %v1068_v44 = vmin.f32 %v1062_v17, 6.0  ;;  %v1067_v12 = vmin.f32 %v1061_v22, 6.0  ;;  %v631_v42 = vsel %vm1847_vm10, %v619_v47, 0.0  ;;  %v632_v24 = vsel %vm1851_vm11, %v620_v48, 0.0 }
 0x249   : > { %v649_v28 = vmul.f32 %v1599_v29, %v631_v42  ;;  %v650_v56 = vmul.f32 %v1599_v29, %v632_v24 }
 0x24a   : > { %v672_v3 = vpop.permute.xlu0 %671  ;;  %v674_v2 = vpop.permute.xlu1 %673  ;;  %v1255_v30 = vpack.c.bf16 %v1068_v44, %v1066_v1  ;;  %v1257_v32 = vpack.c.bf16 %v1067_v12, %v1065_v61 }
 0x24b   : > { %v680_v41 = vsel %vm675_vm4, %v670_v54, %v672_v3  ;;  %v681_v46 = vsel %vm675_vm4, %v672_v3, %v674_v2 }
 0x24c   : > { %1256 = vmatprep.subr.bf16.mxu1 %v1255_v30  ;;  %v692_v10 = vsel %vm1838_vm8, %v680_v41, 0.0  ;;  %v693_v6 = vsel %vm1842_vm9, %v681_v46, 0.0  ;;  %v1071_v41 = vld [vmem:[%s2086_s5] sm:$0xf] }
 0x24d   : > { %1258 = vmatpush1.bf16.msra.mxu1 %v1257_v32  ;;  %v710_v54 = vmul.f32 %v1603_v31, %v692_v10  ;;  %v711_v40 = vmul.f32 %v1603_v31, %v693_v6 }
 0x24e   : > { %v802_v4 = vpop.permute.xlu0 %801  ;;  %v800_v39 = vpop.permute.xlu1 %799 }
 0x24f   : > { %v808_v0 = vsel %vm803_vm5, %v798_v51, %v800_v39  ;;  %v809_v20 = vsel %vm803_vm5, %v800_v39, %v802_v4 }
 0x250   : > { %v820_v29 = vsel %vm1847_vm10, %v808_v0, 0.0  ;;  %v821_v26 = vsel %vm1851_vm11, %v809_v20, 0.0 }
 0x251   : > { %v838_v17 = vmul.f32 %v1633_v11, %v820_v29  ;;  %v839_v61 = vmul.f32 %v1633_v11, %v821_v26 }
 0x252   : > { %v861_v50 = vpop.permute.xlu1 %860  ;;  %v863_v15 = vpop.permute.xlu0 %862 }
 0x253   : > { %v870_v52 = vsel %vm864_vm6, %v861_v50, %v863_v15  ;;  %v869_v51 = vsel %vm864_vm6, %v859_v58, %v861_v50 }
 0x254   : > { %v882_v22 = vsel %vm1842_vm9, %v870_v52, 0.0  ;;  %v881_v58 = vsel %vm1838_vm8, %v869_v51, 0.0 }
 0x255   : > { %v900_v30 = vmul.f32 %v1637_v13, %v882_v22  ;;  %v899_v15 = vmul.f32 %v1637_v13, %v881_v58 }
 0x256   : > { %v989_v14 = vpop.permute.xlu1 %988  ;;  %v564_v60 = vpop.permute.xlu0 %563 }
 0x25a   : > { %v562_v18 = vpop.permute.xlu1 %561  ;;  %v765_v49 = vpop.permute.xlu0 %764 }
 0x25b   : > { %v572_v27 = vsel %vm567_vm12, %v562_v18, %v564_v60 }
 0x25c   : > { %v584_v25 = vadd.f32 %v572_v27, %v511_v16 }
 0x25e   : > { %v761_v8 = vpop.permute.xlu1 %760  ;;  %v952_v53 = vpop.permute.xlu0 %951  ;;  %v655_v5 = vadd.f32 %v649_v28, %v584_v25 }
 0x260   : > { %v716_v62 = vadd.f32 %v710_v54, %v655_v5 }
 0x262   : > { %v566_v19 = vpop.permute.xlu1 %565  ;;  %v987_v1 = vpop.permute.xlu0 %986 }
 0x263   : > { %v573_v63 = vsel %vm567_vm12, %v564_v60, %v566_v19  ;;  %v997_v32 = vsel %vm992_vm7, %v987_v1, %v989_v14  ;;  %v1339_v19 = vld [vmem:[%s1532_s23] sm:$0xff]  ;;  %s1340_s23 = scalar_lea.vmem %s2041_s19, 128 }
 0x264   : > { %v585_v35 = vadd.f32 %v573_v63, %v512_v36  ;;  %v1009_v60 = vsel %vm1847_vm10, %v997_v32, 0.0  ;;  %p1341_p11 = scmp.ne.s32.totalorder %s2041_s19, %s1340_s23  ;;  %p1348_p1 = scmp.lt.s32.totalorder %s1346_s9, %s1340_s23 }
 0x266   : > { %v656_v9 = vadd.f32 %v650_v56, %v585_v35  ;;  %v991_v38 = vpop.permute.xlu1 %990  ;;  %p1342_p12 = pnand %p1341_p11, %p1502_p5  ;;  %p1349_p2 = por %p1348_p1, %p1347_p0 }
 0x267   : > { %v998_v12 = vsel %vm992_vm7, %v989_v14, %v991_v38 }
 0x268   : > { %v717_v59 = vadd.f32 %v711_v40, %v656_v9  ;;  %v1010_v50 = vsel %vm1851_vm11, %v998_v12, 0.0  ;;  %p1343_p13 = pneg %p1342_p12 }
 0x269   : > { %v1028_v21 = vmul.f32 %v1607_v33, %v1010_v50 }
 0x26a   : > { %v763_v43 = vpop.permute.xlu1 %762  ;;  %p1350_p3 = pnand %p1349_p2, %p1343_p13 }
 0x26b   : > { %v771_v31 = vsel %vm766_vm13, %v761_v8, %v763_v43  ;;  %v772_v44 = vsel %vm766_vm13, %v763_v43, %v765_v49  ;;  %v1027_v8 = vmul.f32 %v1607_v33, %v1009_v60 }
 0x26c   : > { %v783_v3 = vadd.f32 %v771_v31, %v716_v62  ;;  %v784_v2 = vadd.f32 %v772_v44, %v717_v59 }
 0x26e   : > { %v844_v23 = vadd.f32 %v838_v17, %v783_v3  ;;  %v845_v4 = vadd.f32 %v839_v61, %v784_v2  ;;  %v954_v39 = vpop.permute.xlu1 %953 }
 0x26f   : > { %v961_v18 = vsel %vm955_vm14, %v952_v53, %v954_v39 }
 0x270   : > { %v906_v11 = vadd.f32 %v900_v30, %v845_v4  ;;  %v905_v47 = vadd.f32 %v899_v15, %v844_v23 }
 0x272   : > { %v973_v45 = vadd.f32 %v961_v18, %v906_v11  ;;  %v950_v48 = vpop.permute.xlu1 %949 }
 0x273   : > { %v960_v14 = vsel %vm955_vm14, %v950_v48, %v952_v53  ;;  %v1076_v33 = vpop.permute.xlu0 %1075 }
 0x274   : > { %v1034_v34 = vadd.f32 %v1028_v21, %v973_v45  ;;  %v972_v49 = vadd.f32 %v960_v14, %v905_v47 }
 0x276   : > { %v1033_v27 = vadd.f32 %v1027_v8, %v972_v49  ;;  %v1058_v13 = vadd.f32 %v1687_v37, %v1034_v34 }
 0x278   : > { %v1064_v55 = vmax.f32 %v1058_v13, 0.0  ;;  %v1057_v57 = vadd.f32 %v1687_v37, %v1033_v27 }
 0x27a   : > { %v1070_v16 = vmin.f32 %v1064_v55, 6.0  ;;  %v1063_v42 = vmax.f32 %v1057_v57, 0.0 }
 0x27c   : > { %1086 = vmatprep.subr.mxu1 %v1070_v16  ;;  %v1069_v24 = vmin.f32 %v1063_v42, 6.0 }
 0x27e   : > { %1087 = vmatpush1.msra.mxu1 %v1069_v24 }
 0x27f   : > { %1247 = vmatmul.mubr.msk.f32.vlgmr.msra.gmra.mrb[0].mxu1 %vm1078_vm15, %v1071_v41 }
 0x352   : > { %v1148_v46 = vpop.f32.mrb[0].mxu1 }
 0x353   : > { %v1149_v25 = vadd.f32 %v1148_v46, %v1076_v33  ;;  %v1150_v37 = vpop.f32.mrb[1].mxu1 }
 0x354   : > { %v1151_v36 = vadd.f32 %v1150_v37, %v1076_v33 }
 0x355   : > { %v1154_v63 = vadd.f32 %v1339_v19, %v1149_v25 }
 0x356   : > { %v1155_v28 = vadd.f32 %v1151_v36, %v1535_v7 }
 0x358   : > { %v1158_v56 = vcombine.low %v1154_v63, %v1155_v28 }
 0x35a   : > { %1160 = vst [vmem:[%s271_s18] sm:$0xff] %v1158_v56 }
 0x35b   : > { %1353 = shalt.err (!%p1350_p3)
}
 0x35c   : > { %s1354_s13 = scalar_lea.hbm %s2039_s22, 128  ;;  %s1358_s16 = scalar_lea.hbm %s2088_s7, 256 }
 0x35d   : > { %p1355_p4 = scmp.ne.s32.totalorder %s2039_s22, %s1354_s13  ;;  %p1359_p9 = scmp.lt.u32.totalorder %s2039_s22, %s2088_s7 }
 0x35e   : > { %p1360_p10 = scmp.lt.u32.totalorder %s1358_s16, %s1354_s13  ;;  %p1362_p12 = scmp.lt.u32.totalorder %s1354_s13, %s2039_s22 }
 0x35f   : > { %p1356_p7 = pnand %p1355_p4, %p1502_p5 }
 0x360   : > { %p1361_p11 = por %p1360_p10, %p1359_p9 }
 0x361   : > { %p1357_p8 = pneg %p1356_p7 }
 0x362   : > { %p1363_p13 = por %p1362_p12, %p1361_p11 }
 0x364   : > { %p1364_p0 = pnand %p1363_p13, %p1357_p8 }
 0x366   : > { %1367 = shalt.err (!%p1364_p0)
}
 0x367   : > { %1259 = dma.vmem_to_hbm [thread:$0]  (%p1502_p5), %s2041_s19, 128, %s2039_s22, %s1162_s29  }
 0x368 PF: > { %p1265_p1 = scmp.ge.s32.totalorder %s1402_s27, 2  ;;  %s1188_s20 = sand.u32 1, %s1390_s24  }
 0x369   : > { %s1189_s21 = scalar_lea.sflag [#allocation3], %s1188_s20 }
 0x36a   : > { %p1262_p2 = pnand %p1265_p1, %p1506_p6 }
 0x36c   : > { %1385 = dma.done.wait (!%p1262_p2), %s1189_s21, 128  }
 0x36d   : > { %1387 = vsyncadd (!%p1262_p2), %s1189_s21, 4294967168  ;;  %p17_p3 = scmp.ge.s32.totalorder %s1489_s30, 4   ;;  %s2099_s24 = smov %s1394_s25 }
 0x36e   : > { %s2100_s25 = smov %s1398_s26  ;;  %s2101_s26 = smov %s1500_s10 }
 0x36f   : > { %s2102_s27 = smov %s1489_s30  ;;  %19 = sbr.rel (!%p17_p3) target bundleno = 3 (0x3), region = 83 }
 0x376   :  { %1194 = vsyncpa [#allocation3], 1 }
 0x377   :  { %1196 = vsyncpa [#allocation3 + $0x1], 1 }

</bundles_post_ra>
